<compile_context>
chip_gen: v7x
topology: tpu7x:2x2x1
jax: 0.10.0
libtpu: 0.0.40
codegen_flags: <defaults>
</compile_context>

<pallas_src>
import functools

import jax
import jax.numpy as jnp
import numpy as np
from jax.experimental import pallas as pl
from jax.experimental.pallas import tpu as pltpu

F_FEAT = 32                  # stand-in backbone num_features
DEFAULT_CHUNK = 256          # pseudo-output columns per inner step (multiple of 128)
_STATIC_UNROLL_CHUNKS = 8    # fully unroll the in-kernel chunk loop below this count
_VMEM_LIMIT_BYTES = 48 * 1024 * 1024   # > v5e 16MiB scoped default, < v7x 64MiB physical


def _round_up(x, m):
    return ((x + m - 1) // m) * m


# ------------------------- Pallas kernel -------------------------

def _fused_kernel(xp_ref, wc_ref, bc_ref, mask_ref, wl_ref, bl_ref, o_ref, acc_ref,
                  *, n_chunks, n_extra, chunk, shifts, hw):
    """One grid step = one image: conv3x3+bias+ReLU -> global-avg-pool -> linear(F,1).

    xp_ref  : (1, n_chunks+n_extra, C, chunk) bf16  zero-padded image, flattened + chunked
    wc_ref  : (F, KPAD) bf16   conv weight, tap-major (i,j,c) columns, zero-padded to KPAD
    bc_ref  : (F, 1)  f32      conv bias
    mask_ref: (n_chunks, chunk) f32  1.0 on the HW valid pseudo-output columns, else 0.0
    wl_ref  : (F, 1)  f32      head linear weight
    bl_ref  : (1, 1)  f32      head linear bias
    o_ref   : (1, 1, 128) f32  logit broadcast across 128 lanes (dense store)
    acc_ref : (F, 128) f32     lane-replicated running spatial sum (scratch)
    """
    acc_ref[...] = jnp.zeros_like(acc_ref)

    wc = wc_ref[...]                      # (F, KPAD) bf16, loop-invariant
    bc = bc_ref[...]                      # (F, 1) f32
    kpad = wc.shape[1]
    c_in = xp_ref.shape[2]
    zrows = kpad - len(shifts) * c_in     # 32 - 27 = 5 zero rows (K padding, VMEM only)
    zpad = jnp.zeros((zrows, chunk), dtype=wc.dtype) if zrows else None

    def chunk_body(q):
        # Contiguous flat-pixel window covering this chunk plus the conv look-ahead halo.
        pieces = [xp_ref[0, q + e] for e in range(1 + n_extra)]      # (C, chunk) each
        window = jnp.concatenate(pieces, axis=-1)                    # (C, (1+n_extra)*chunk)
        # In-VMEM im2col: the 9 taps of a 3x3 conv on the row-padded flat image are pure
        # +shift reads; assemble the (KPAD, chunk) patch matrix from static lane slices.
        taps = [window[:, s:s + chunk] for s in shifts]              # 9 x (C, chunk)
        if zpad is not None:
            taps.append(zpad)
        patch = jnp.concatenate(taps, axis=0)                        # (KPAD, chunk) bf16
        y = jnp.dot(wc, patch, preferred_element_type=jnp.float32)   # (F, chunk) f32, MXU
        y = jnp.maximum(y + bc, 0.0)                                 # bias + ReLU (f32, VPU)
        # One precomputed-mask vmul zeroes the stride-trick garbage columns + tail pad.
        y = y * mask_ref[pl.ds(q, 1), :]                             # (1, chunk) broadcast
        # Lane-partial tree-add into the lane-replicated accumulator (no XLU in the loop).
        part = y[:, 0:128]
        for c in range(1, chunk // 128):
            part = part + y[:, c * 128:(c + 1) * 128]
        acc_ref[...] += part

    if n_chunks <= _STATIC_UNROLL_CHUNKS:
        for q in range(n_chunks):                                    # static unroll
            chunk_body(q)
    else:
        def body(q, carry):
            chunk_body(q)
            return carry
        jax.lax.fori_loop(0, n_chunks, body, 0)                      # scalable path

    # Finalize: single deferred cross-lane reduce (XLU) + tiny head, dense 128-lane store.
    feat_sum = jnp.sum(acc_ref[...], axis=1, keepdims=True)          # (F, 1)
    logit = (jnp.sum(feat_sum * wl_ref[...], axis=0, keepdims=True) * (1.0 / hw)
             + bl_ref[...])                                          # (1, 1)
    o_ref[...] = jnp.broadcast_to(logit, o_ref.shape)


# ------------------------- host-side prep (no im2col, ~1x image bytes) -------------------------

def _prep_inputs(images, params, chunk):
    B, C, H, W = images.shape
    fch = params["conv_w"].shape[0]
    wp = W + 2
    p_len = H * wp                                  # pseudo-output length (stride-trick)
    n_chunks = -(-p_len // chunk)
    win = _round_up(2 * wp + 2, 128)                # conv look-ahead span, lane aligned
    n_extra = -(-win // chunk)                      # trailing all-zero halo chunks
    total = (n_chunks + n_extra) * chunk
    lraw = (H + 2) * wp

    xp = jnp.pad(images, ((0, 0), (0, 0), (1, 1), (1, 1)))           # SAME-conv zero pad
    flat = xp.reshape(B, C, lraw)
    flat = jnp.pad(flat, ((0, 0), (0, 0), (0, total - lraw)))
    xp_chunks = jnp.transpose(flat.reshape(B, C, n_chunks + n_extra, chunk),
                              (0, 2, 1, 3)).astype(jnp.bfloat16)     # (B, NCt, C, chunk)

    # Valid pseudo-output columns: p < H*(W+2) and (p mod (W+2)) < W  (exactly H*W ones).
    p_idx = np.arange(n_chunks * chunk)
    mask = ((p_idx < p_len) & ((p_idx % wp) < W)).astype(np.float32)
    mask = jnp.asarray(mask.reshape(n_chunks, chunk))

    kpad = _round_up(9 * C, 8)                                        # 27 -> 32 (VMEM only)
    wc = jnp.transpose(params["conv_w"], (0, 2, 3, 1)).reshape(fch, 9 * C)  # (i,j,c) order
    wc = jnp.pad(wc, ((0, 0), (0, kpad - 9 * C))).astype(jnp.bfloat16)
    bc = params["conv_b"].reshape(fch, 1).astype(jnp.float32)
    wl = params["linear_w"].reshape(fch, 1).astype(jnp.float32)
    bl = params["linear_b"].reshape(1, 1).astype(jnp.float32)
    shifts = tuple(i * wp + j for i in range(3) for j in range(3))
    return xp_chunks, wc, bc, mask, wl, bl, shifts, n_chunks, n_extra, kpad


def init_params(key, in_chans=3, num_features=F_FEAT):
    k1, k2, k3, k4 = jax.random.split(key, 4)
    conv_w = jax.random.normal(k1, (num_features, in_chans, 3, 3), jnp.float32) * 0.1
    conv_b = jax.random.normal(k2, (num_features,), jnp.float32) * 0.01
    linear_w = jax.random.normal(k3, (1, num_features), jnp.float32) * 0.1   # nn.Linear(F, 1)
    linear_b = jax.random.normal(k4, (1,), jnp.float32) * 0.01
    return dict(conv_w=conv_w, conv_b=conv_b, linear_w=linear_w, linear_b=linear_b)


def isic_net_binary_forward(images, params, chunk=DEFAULT_CHUNK):
    """images: (B, 3, H, W) f32 -> logits (B, 1) f32 (eval-mode, use_meta=False path)."""
    B, C, H, W = images.shape
    fch = params["conv_w"].shape[0]
    assert chunk % 128 == 0, "chunk must be a multiple of 128 (lane width)"

    (xp_chunks, wc, bc, mask, wl, bl,
     shifts, n_chunks, n_extra, kpad) = _prep_inputs(images, params, chunk)
    nct = n_chunks + n_extra

    kernel = functools.partial(_fused_kernel, n_chunks=n_chunks, n_extra=n_extra,
                               chunk=chunk, shifts=shifts, hw=H * W)

    out = pl.pallas_call(
        kernel,
        out_shape=jax.ShapeDtypeStruct((B, 1, 128), jnp.float32),
        grid_spec=pltpu.PrefetchScalarGridSpec(
            num_scalar_prefetch=0,
            grid=(B,),                                   # one grid step per image
            in_specs=[
                pl.BlockSpec((1, nct, C, chunk), lambda b: (b, 0, 0, 0)),
                pl.BlockSpec((fch, kpad), lambda b: (0, 0)),
                pl.BlockSpec((fch, 1), lambda b: (0, 0)),
                pl.BlockSpec((n_chunks, chunk), lambda b: (0, 0)),
                pl.BlockSpec((fch, 1), lambda b: (0, 0)),
                pl.BlockSpec((1, 1), lambda b: (0, 0)),
            ],
            out_specs=pl.BlockSpec((1, 1, 128), lambda b: (b, 0, 0)),
            scratch_shapes=[pltpu.VMEM((fch, 128), jnp.float32)],
        ),
        compiler_params=pltpu.CompilerParams(
            dimension_semantics=("parallel",),
            vmem_limit_bytes=_VMEM_LIMIT_BYTES),
    )(xp_chunks, wc, bc, mask, wl, bl)

    return out[:, 0, :1]   # (B, 1)


def reference_forward(images, params):
    """Pure-JAX reference with matching bf16-input / f32-accumulation conv math."""
    feat = jax.lax.conv_general_dilated(
        images.astype(jnp.bfloat16), params["conv_w"].astype(jnp.bfloat16),
        window_strides=(1, 1), padding="SAME",
        dimension_numbers=("NCHW", "OIHW", "NCHW"),
        preferred_element_type=jnp.float32)
    feat = jnp.maximum(feat + params["conv_b"][None, :, None, None], 0.0)
    pooled = jnp.mean(feat, axis=(2, 3))                   # adaptive_avg_pool2d(., 1)
    return pooled @ params["linear_w"].T + params["linear_b"][None, :]


if __name__ == "__main__":
    key = jax.random.PRNGKey(0)
    kp, kx = jax.random.split(key)
    params = init_params(kp)

    B, C, H, W = 2, 3, 16, 16
    images = jax.random.normal(kx, (B, C, H, W), jnp.float32)

    # H*W+garbage pseudo-outputs = 288 > chunk=256, so the in-kernel multi-chunk loop,
    # the look-ahead halo chunk, and the garbage/tail mask are all exercised.
    logits = jax.block_until_ready(isic_net_binary_forward(images, params))
    ref = jax.block_until_ready(reference_forward(images, params))

    assert logits.shape == (B, 1)
    np.testing.assert_allclose(np.asarray(logits), np.asarray(ref), rtol=1e-3, atol=1e-3)
    print("KERNEL_OK")
</pallas_src>

<mosaic_0001>
module attributes {stable_mosaic.version = 11 : i64} {
  func.func @_fused_kernel(%arg0: i32, %arg1: memref<1x3x3x256xbf16, #tpu.memory_space<vmem>>, %arg2: memref<32x32xbf16, #tpu.memory_space<vmem>>, %arg3: memref<32x1xf32, #tpu.memory_space<vmem>>, %arg4: memref<2x256xf32, #tpu.memory_space<vmem>>, %arg5: memref<32x1xf32, #tpu.memory_space<vmem>>, %arg6: memref<1x1xf32, #tpu.memory_space<vmem>>, %arg7: memref<1x1x128xf32, #tpu.memory_space<vmem>>, %arg8: memref<32x128xf32, #tpu.memory_space<vmem>>) attributes {dimension_semantics = [#tpu.dimension_semantics<parallel>], iteration_bounds = array<i64: 2>, scalar_prefetch = 0 : i64, scratch_operands = 1 : i64, tpu.core_type = #tpu.core_type<tc>, window_params = [{transform_indices = @transform_0, window_bounds = array<i64: 1, 3, 3, 256>}, {pipeline_mode = #tpu.pipeline_mode<synchronous>, transform_indices = @transform_1, window_bounds = array<i64: 32, 32>}, {pipeline_mode = #tpu.pipeline_mode<synchronous>, transform_indices = @transform_2, window_bounds = array<i64: 32, 1>}, {pipeline_mode = #tpu.pipeline_mode<synchronous>, transform_indices = @transform_3, window_bounds = array<i64: 2, 256>}, {pipeline_mode = #tpu.pipeline_mode<synchronous>, transform_indices = @transform_4, window_bounds = array<i64: 32, 1>}, {pipeline_mode = #tpu.pipeline_mode<synchronous>, transform_indices = @transform_5, window_bounds = array<i64: 1, 1>}, {transform_indices = @transform_6, window_bounds = array<i64: 1, 1, 128>}]} {
    %cst = arith.constant 0.000000e+00 : f32
    %0 = vector.broadcast %cst : f32 to vector<32x128xf32>
    %c0 = arith.constant 0 : index
    %c0_0 = arith.constant 0 : index
    %1 = vector.load %arg8[%c0, %c0_0] : memref<32x128xf32, #tpu.memory_space<vmem>>, vector<32x128xf32>
    tpu.vector_store %arg8[%c0, %c0_0], %0 {strides = array<i32>} : memref<32x128xf32, #tpu.memory_space<vmem>>, vector<32x128xf32>,
    %c0_1 = arith.constant 0 : index
    %c0_2 = arith.constant 0 : index
    %2 = vector.load %arg2[%c0_1, %c0_2] : memref<32x32xbf16, #tpu.memory_space<vmem>>, vector<32x32xbf16>
    %c0_3 = arith.constant 0 : index
    %c0_4 = arith.constant 0 : index
    %3 = vector.load %arg3[%c0_3, %c0_4] : memref<32x1xf32, #tpu.memory_space<vmem>>, vector<32x1xf32>
    %cst_5 = arith.constant 0.000000e+00 : bf16
    %4 = vector.broadcast %cst_5 : bf16 to vector<5x256xbf16>
    %c0_6 = arith.constant 0 : index
    %c0_7 = arith.constant 0 : index
    %c0_8 = arith.constant 0 : index
    %c0_9 = arith.constant 0 : index
    %5 = vector.load %arg1[%c0_6, %c0_7, %c0_8, %c0_9] : memref<1x3x3x256xbf16, #tpu.memory_space<vmem>>, vector<1x1x3x256xbf16>
    %6 = vector.shape_cast %5 : vector<1x1x3x256xbf16> to vector<3x256xbf16>
    %c0_10 = arith.constant 0 : index
    %c1 = arith.constant 1 : index
    %c0_11 = arith.constant 0 : index
    %c0_12 = arith.constant 0 : index
    %7 = vector.load %arg1[%c0_10, %c1, %c0_11, %c0_12] : memref<1x3x3x256xbf16, #tpu.memory_space<vmem>>, vector<1x1x3x256xbf16>
    %8 = vector.shape_cast %7 : vector<1x1x3x256xbf16> to vector<3x256xbf16>
    %9 = tpu.concatenate %6, %8 in 1 : vector<3x256xbf16>, vector<3x256xbf16> -> vector<3x512xbf16>
    %10 = vector.extract_strided_slice %9 {offsets = [0, 0], sizes = [3, 256], strides = [1, 1]} : vector<3x512xbf16> to vector<3x256xbf16>
    %11 = vector.extract_strided_slice %9 {offsets = [0, 1], sizes = [3, 256], strides = [1, 1]} : vector<3x512xbf16> to vector<3x256xbf16>
    %12 = vector.extract_strided_slice %9 {offsets = [0, 2], sizes = [3, 256], strides = [1, 1]} : vector<3x512xbf16> to vector<3x256xbf16>
    %13 = vector.extract_strided_slice %9 {offsets = [0, 18], sizes = [3, 256], strides = [1, 1]} : vector<3x512xbf16> to vector<3x256xbf16>
    %14 = vector.extract_strided_slice %9 {offsets = [0, 19], sizes = [3, 256], strides = [1, 1]} : vector<3x512xbf16> to vector<3x256xbf16>
    %15 = vector.extract_strided_slice %9 {offsets = [0, 20], sizes = [3, 256], strides = [1, 1]} : vector<3x512xbf16> to vector<3x256xbf16>
    %16 = vector.extract_strided_slice %9 {offsets = [0, 36], sizes = [3, 256], strides = [1, 1]} : vector<3x512xbf16> to vector<3x256xbf16>
    %17 = vector.extract_strided_slice %9 {offsets = [0, 37], sizes = [3, 256], strides = [1, 1]} : vector<3x512xbf16> to vector<3x256xbf16>
    %18 = vector.extract_strided_slice %9 {offsets = [0, 38], sizes = [3, 256], strides = [1, 1]} : vector<3x512xbf16> to vector<3x256xbf16>
    %19 = tpu.concatenate %10, %11, %12, %13, %14, %15, %16, %17, %18, %4 in 0 : vector<3x256xbf16>, vector<3x256xbf16>, vector<3x256xbf16>, vector<3x256xbf16>, vector<3x256xbf16>, vector<3x256xbf16>, vector<3x256xbf16>, vector<3x256xbf16>, vector<3x256xbf16>, vector<5x256xbf16> -> vector<32x256xbf16>
    %cst_13 = arith.constant dense<0.000000e+00> : vector<32x256xf32>
    %20 = tpu.matmul %2, %19, %cst_13 {dimension_numbers = #tpu.dot_dimension_numbers<[1], [0], [0], [1], [0, 0, 1, 1], [], []>} : vector<32x32xbf16>, vector<32x256xbf16>, vector<32x256xf32> -> vector<32x256xf32>
    %21 = vector.broadcast %3 : vector<32x1xf32> to vector<32x256xf32>
    %22 = arith.addf %20, %21 : vector<32x256xf32>
    %cst_14 = arith.constant 0.000000e+00 : f32
    %23 = vector.broadcast %cst_14 : f32 to vector<32x256xf32>
    %24 = arith.maximumf %22, %23 : vector<32x256xf32>
    %c0_15 = arith.constant 0 : index
    %c0_16 = arith.constant 0 : index
    %25 = vector.load %arg4[%c0_15, %c0_16] : memref<2x256xf32, #tpu.memory_space<vmem>>, vector<1x256xf32>
    %26 = vector.broadcast %25 : vector<1x256xf32> to vector<32x256xf32>
    %27 = arith.mulf %24, %26 : vector<32x256xf32>
    %28 = vector.extract_strided_slice %27 {offsets = [0, 0], sizes = [32, 128], strides = [1, 1]} : vector<32x256xf32> to vector<32x128xf32>
    %29 = vector.extract_strided_slice %27 {offsets = [0, 128], sizes = [32, 128], strides = [1, 1]} : vector<32x256xf32> to vector<32x128xf32>
    %30 = arith.addf %28, %29 : vector<32x128xf32>
    %c0_17 = arith.constant 0 : index
    %c0_18 = arith.constant 0 : index
    %31 = vector.load %arg8[%c0_17, %c0_18] : memref<32x128xf32, #tpu.memory_space<vmem>>, vector<32x128xf32>
    %32 = arith.addf %31, %30 : vector<32x128xf32>
    %c0_19 = arith.constant 0 : index
    %c0_20 = arith.constant 0 : index
    %33 = vector.load %arg8[%c0_19, %c0_20] : memref<32x128xf32, #tpu.memory_space<vmem>>, vector<32x128xf32>
    tpu.vector_store %arg8[%c0_19, %c0_20], %32 {strides = array<i32>} : memref<32x128xf32, #tpu.memory_space<vmem>>, vector<32x128xf32>,
    %c0_21 = arith.constant 0 : index
    %c1_22 = arith.constant 1 : index
    %c0_23 = arith.constant 0 : index
    %c0_24 = arith.constant 0 : index
    %34 = vector.load %arg1[%c0_21, %c1_22, %c0_23, %c0_24] : memref<1x3x3x256xbf16, #tpu.memory_space<vmem>>, vector<1x1x3x256xbf16>
    %35 = vector.shape_cast %34 : vector<1x1x3x256xbf16> to vector<3x256xbf16>
    %c0_25 = arith.constant 0 : index
    %c2 = arith.constant 2 : index
    %c0_26 = arith.constant 0 : index
    %c0_27 = arith.constant 0 : index
    %36 = vector.load %arg1[%c0_25, %c2, %c0_26, %c0_27] : memref<1x3x3x256xbf16, #tpu.memory_space<vmem>>, vector<1x1x3x256xbf16>
    %37 = vector.shape_cast %36 : vector<1x1x3x256xbf16> to vector<3x256xbf16>
    %38 = tpu.concatenate %35, %37 in 1 : vector<3x256xbf16>, vector<3x256xbf16> -> vector<3x512xbf16>
    %39 = vector.extract_strided_slice %38 {offsets = [0, 0], sizes = [3, 256], strides = [1, 1]} : vector<3x512xbf16> to vector<3x256xbf16>
    %40 = vector.extract_strided_slice %38 {offsets = [0, 1], sizes = [3, 256], strides = [1, 1]} : vector<3x512xbf16> to vector<3x256xbf16>
    %41 = vector.extract_strided_slice %38 {offsets = [0, 2], sizes = [3, 256], strides = [1, 1]} : vector<3x512xbf16> to vector<3x256xbf16>
    %42 = vector.extract_strided_slice %38 {offsets = [0, 18], sizes = [3, 256], strides = [1, 1]} : vector<3x512xbf16> to vector<3x256xbf16>
    %43 = vector.extract_strided_slice %38 {offsets = [0, 19], sizes = [3, 256], strides = [1, 1]} : vector<3x512xbf16> to vector<3x256xbf16>
    %44 = vector.extract_strided_slice %38 {offsets = [0, 20], sizes = [3, 256], strides = [1, 1]} : vector<3x512xbf16> to vector<3x256xbf16>
    %45 = vector.extract_strided_slice %38 {offsets = [0, 36], sizes = [3, 256], strides = [1, 1]} : vector<3x512xbf16> to vector<3x256xbf16>
    %46 = vector.extract_strided_slice %38 {offsets = [0, 37], sizes = [3, 256], strides = [1, 1]} : vector<3x512xbf16> to vector<3x256xbf16>
    %47 = vector.extract_strided_slice %38 {offsets = [0, 38], sizes = [3, 256], strides = [1, 1]} : vector<3x512xbf16> to vector<3x256xbf16>
    %48 = tpu.concatenate %39, %40, %41, %42, %43, %44, %45, %46, %47, %4 in 0 : vector<3x256xbf16>, vector<3x256xbf16>, vector<3x256xbf16>, vector<3x256xbf16>, vector<3x256xbf16>, vector<3x256xbf16>, vector<3x256xbf16>, vector<3x256xbf16>, vector<3x256xbf16>, vector<5x256xbf16> -> vector<32x256xbf16>
    %cst_28 = arith.constant dense<0.000000e+00> : vector<32x256xf32>
    %49 = tpu.matmul %2, %48, %cst_28 {dimension_numbers = #tpu.dot_dimension_numbers<[1], [0], [0], [1], [0, 0, 1, 1], [], []>} : vector<32x32xbf16>, vector<32x256xbf16>, vector<32x256xf32> -> vector<32x256xf32>
    %50 = vector.broadcast %3 : vector<32x1xf32> to vector<32x256xf32>
    %51 = arith.addf %49, %50 : vector<32x256xf32>
    %cst_29 = arith.constant 0.000000e+00 : f32
    %52 = vector.broadcast %cst_29 : f32 to vector<32x256xf32>
    %53 = arith.maximumf %51, %52 : vector<32x256xf32>
    %c1_30 = arith.constant 1 : index
    %c0_31 = arith.constant 0 : index
    %54 = vector.load %arg4[%c1_30, %c0_31] : memref<2x256xf32, #tpu.memory_space<vmem>>, vector<1x256xf32>
    %55 = vector.broadcast %54 : vector<1x256xf32> to vector<32x256xf32>
    %56 = arith.mulf %53, %55 : vector<32x256xf32>
    %57 = vector.extract_strided_slice %56 {offsets = [0, 0], sizes = [32, 128], strides = [1, 1]} : vector<32x256xf32> to vector<32x128xf32>
    %58 = vector.extract_strided_slice %56 {offsets = [0, 128], sizes = [32, 128], strides = [1, 1]} : vector<32x256xf32> to vector<32x128xf32>
    %59 = arith.addf %57, %58 : vector<32x128xf32>
    %c0_32 = arith.constant 0 : index
    %c0_33 = arith.constant 0 : index
    %60 = vector.load %arg8[%c0_32, %c0_33] : memref<32x128xf32, #tpu.memory_space<vmem>>, vector<32x128xf32>
    %61 = arith.addf %60, %59 : vector<32x128xf32>
    %c0_34 = arith.constant 0 : index
    %c0_35 = arith.constant 0 : index
    %62 = vector.load %arg8[%c0_34, %c0_35] : memref<32x128xf32, #tpu.memory_space<vmem>>, vector<32x128xf32>
    tpu.vector_store %arg8[%c0_34, %c0_35], %61 {strides = array<i32>} : memref<32x128xf32, #tpu.memory_space<vmem>>, vector<32x128xf32>,
    %c0_36 = arith.constant 0 : index
    %c0_37 = arith.constant 0 : index
    %63 = vector.load %arg8[%c0_36, %c0_37] : memref<32x128xf32, #tpu.memory_space<vmem>>, vector<32x128xf32>
    %cst_38 = arith.constant dense<0.000000e+00> : vector<32xf32>
    %64 = vector.multi_reduction <add>, %63, %cst_38 [1] : vector<32x128xf32> to vector<32xf32>
    %65 = vector.shape_cast %64 : vector<32xf32> to vector<32x1xf32>
    %c0_39 = arith.constant 0 : index
    %c0_40 = arith.constant 0 : index
    %66 = vector.load %arg5[%c0_39, %c0_40] : memref<32x1xf32, #tpu.memory_space<vmem>>, vector<32x1xf32>
    %67 = arith.mulf %65, %66 : vector<32x1xf32>
    %cst_41 = arith.constant dense<0.000000e+00> : vector<1xf32>
    %68 = vector.multi_reduction <add>, %67, %cst_41 [0] : vector<32x1xf32> to vector<1xf32>
    %69 = vector.shape_cast %68 : vector<1xf32> to vector<1x1xf32>
    %cst_42 = arith.constant 3.906250e-03 : f32
    %70 = vector.broadcast %cst_42 : f32 to vector<1x1xf32>
    %71 = arith.mulf %69, %70 : vector<1x1xf32>
    %c0_43 = arith.constant 0 : index
    %c0_44 = arith.constant 0 : index
    %72 = vector.load %arg6[%c0_43, %c0_44] : memref<1x1xf32, #tpu.memory_space<vmem>>, vector<1x1xf32>
    %73 = arith.addf %71, %72 : vector<1x1xf32>
    %74 = vector.shape_cast %73 : vector<1x1xf32> to vector<1x1x1xf32>
    %75 = vector.broadcast %74 : vector<1x1x1xf32> to vector<1x1x128xf32>
    %c0_45 = arith.constant 0 : index
    %c0_46 = arith.constant 0 : index
    %c0_47 = arith.constant 0 : index
    %76 = vector.load %arg7[%c0_45, %c0_46, %c0_47] : memref<1x1x128xf32, #tpu.memory_space<vmem>>, vector<1x1x128xf32>
    tpu.vector_store %arg7[%c0_45, %c0_46, %c0_47], %75 {strides = array<i32>} : memref<1x1x128xf32, #tpu.memory_space<vmem>>, vector<1x1x128xf32>,
    return
  }
  func.func @transform_0(%arg0: i32) -> (i32, i32, i32, i32) {
    %c0_i32 = arith.constant 0 : i32
    %c0_i32_0 = arith.constant 0 : i32
    %c0_i32_1 = arith.constant 0 : i32
    %c0_i32_2 = arith.constant 0 : i32
    return %arg0, %c0_i32, %c0_i32_0, %c0_i32_1 : i32, i32, i32, i32
  }
  func.func @transform_1(%arg0: i32) -> (i32, i32) {
    %c0_i32 = arith.constant 0 : i32
    %c0_i32_0 = arith.constant 0 : i32
    %c0_i32_1 = arith.constant 0 : i32
    return %c0_i32, %c0_i32_0 : i32, i32
  }
  func.func @transform_2(%arg0: i32) -> (i32, i32) {
    %c0_i32 = arith.constant 0 : i32
    %c0_i32_0 = arith.constant 0 : i32
    %c0_i32_1 = arith.constant 0 : i32
    return %c0_i32, %c0_i32_0 : i32, i32
  }
  func.func @transform_3(%arg0: i32) -> (i32, i32) {
    %c0_i32 = arith.constant 0 : i32
    %c0_i32_0 = arith.constant 0 : i32
    %c0_i32_1 = arith.constant 0 : i32
    return %c0_i32, %c0_i32_0 : i32, i32
  }
  func.func @transform_4(%arg0: i32) -> (i32, i32) {
    %c0_i32 = arith.constant 0 : i32
    %c0_i32_0 = arith.constant 0 : i32
    %c0_i32_1 = arith.constant 0 : i32
    return %c0_i32, %c0_i32_0 : i32, i32
  }
  func.func @transform_5(%arg0: i32) -> (i32, i32) {
    %c0_i32 = arith.constant 0 : i32
    %c0_i32_0 = arith.constant 0 : i32
    %c0_i32_1 = arith.constant 0 : i32
    return %c0_i32, %c0_i32_0 : i32, i32
  }
  func.func @transform_6(%arg0: i32) -> (i32, i32, i32) {
    %c0_i32 = arith.constant 0 : i32
    %c0_i32_0 = arith.constant 0 : i32
    %c0_i32_1 = arith.constant 0 : i32
    return %arg0, %c0_i32, %c0_i32_0 : i32, i32, i32
  }
}

</mosaic_0001>

<bundles_post_ra>
// kernel: tpu_custom_call.1
= control target key start
LH: loop header
LB: loop body
LE: loop exit
PB: predicated region body
PF: predicated region fallthrough
CT: control target
= control target key end

     0   :  { %s1666_s0 = inlined_call_operand.vmem [shape: bf16[2,3,3,256], index: 0, kind: input, shape index: {}]   ;;  %s1667_s1 = inlined_call_operand.vmem [shape: bf16[32,32], index: 1, kind: input, shape index: {}]   ;;  %s1668_s2 = inlined_call_operand.vmem [shape: f32[32,1], index: 2, kind: input, shape index: {}]   ;;  %s1669_s3 = inlined_call_operand.vmem [shape: f32[2,256], index: 3, kind: input, shape index: {}]   ;;  %s1670_s4 = inlined_call_operand.vmem [shape: f32[32,1], index: 4, kind: input, shape index: {}]   ;;  %s1671_s5 = inlined_call_operand.<no memory space> [shape: f32[1,1], index: 5, kind: input, shape index: {}]   ;;  %s1672_s6 = inlined_call_operand.hbm [shape: f32[2,1,128], index: 6, kind: output, shape index: {}]  }
   0x1   :  { %v11_v0 = vstv %s1671_s5 }
   0x2   :  { %12 = vst [vmem:[#allocation3] sm:$0x1] %v11_v0 }
   0x3   :  { %13 = vsyncpa [#allocation5], 0 }
   0x4   :  { %15 = vsyncpa [#allocation5 + $0x1], 0  ;;  %s1244_s23 = smov 0   ;;  %s1246_s24 = smov 0  }
   0x5   :  { %s1248_s25 = smov 0   ;;  %s1250_s26 = smov 0  }
   0x6 LB: > { %s1265_s5 = sadd.s32 4294967295, %s1194_s26   ;;  %s1042_s27 = sadd.s32 4294967294, %s1194_s26   ;;  %s1194_s26 = sphi %s1250_s26, %s1688_s26   ;;  %s1190_s25 = sphi %s1248_s25, %s1687_s25   ;;  %s1186_s24 = sphi %s1246_s24, %s1686_s24   ;;  %s1182_s23 = sphi %s1244_s23, %s1685_s23  }
   0x7   : > { %s1269_s28 = sadd.s32 1, %s1194_s26   ;;  %s159_s29 = sadd.s32 1, %s1190_s25 }
   0x8   : > { %s156_s30 = ssub.s32 %s1194_s26, %s1269_s28  ;;  %p169_p0 = scmp.ne.s32.totalorder %s1190_s25, %s1186_s24 }
   0x9   : > { %p157_p1 = scmp.eq.s32.totalorder %s156_s30, 0  ;;  %p170_p2 = scmp.eq.s32.totalorder %s1265_s5, 1 }
   0xa   : > { %p175_p3 = scmp.ne.s32.totalorder %s1186_s24, %s1182_s23  ;;  %p176_p4 = scmp.eq.s32.totalorder %s1042_s27, 1 }
   0xb   : > { %s1280_s7 = scalar_select %p157_p1, %s1190_s25, %s159_s29  }
   0xc   : > { %p1282_p5 = por %p170_p2, %p169_p0  ;;  %p1286_p6 = por %p176_p4, %p175_p3 }
   0xd   : > { %p1045_p7 = scmp.ge.s32.totalorder %s1194_s26, 1  ;;  %p217_p8 = scmp.lt.s32.totalorder %s1194_s26, 3 }
   0xf   : > { %p218_p9 = pnand %p1045_p7, %p217_p8 }
  0x10   : > { %p246_p10 = scmp.lt.s32.totalorder (!%p218_p9), %s1265_s5, 1  ;;  %s1196_s15 = smov (!%p218_p9), 126   ;;  %vm316_vm0 = vcmask (!%p218_p9), 1039360   ;;  %vm434_vm1 = vcmask (!%p218_p9), 1041408   ;;  %vm435_vm2 = vsmask.f32 (!%p218_p9), 1280 }
  0x11   : > { %221 = sbr.rel (%p218_p9) target bundleno = 794 (0x31a), region = 44  ;;  %s1197_s16 = smov (!%p218_p9), 127   ;;  %vm330_vm3 = vcmask (!%p218_p9), 1031168   ;;  %vm1455_vm4 = vmand (!%p218_p9), %vm434_vm1, %vm435_vm2  ;;  %vm348_vm5 = vcmask (!%p218_p9), 900096   ;;  %vm448_vm6 = vcmask (!%p218_p9), 1044480   ;;  %vm439_vm8 = vcmask (!%p218_p9), 1042432  }
  0x12   : > { %s1198_s17 = smov (!%p218_p9), 110   ;;  %s1199_s18 = smov (!%p218_p9), 109   ;;  %vm449_vm7 = vsmask.f32 (!%p218_p9), 4352  ;;  %vm362_vm9 = vcmask (!%p218_p9), 891904   ;;  %vm453_vm10 = vcmask (!%p218_p9), 1045504  }
  0x13   : > { %s1200_s19 = smov (!%p218_p9), 108   ;;  %s1201_s20 = smov (!%p218_p9), 92   ;;  %vm462_vm11 = vcmask (!%p218_p9), 1047552   ;;  %vm463_vm12 = vsmask.f32 (!%p218_p9), 7424  ;;  %vm1470_vm13 = vmand (!%p218_p9), %vm448_vm6, %vm449_vm7  ;;  %vm383_vm14 = vcmask (!%p218_p9), 883712  }
  0x14   : > { %s1202_s21 = smov (!%p218_p9), 91   ;;  %s1203_s22 = smov (!%p218_p9), 90   ;;  %vm1487_vm15 = vmand (!%p218_p9), %vm462_vm11, %vm463_vm12  ;;  %vm417_vm1 = vcmask (!%p218_p9), 744448   ;;  %vm477_vm2 = vsmask.f32 (!%p218_p9), 2304  ;;  %vm431_vm6 = vcmask (!%p218_p9), 736256  }
  0x15   : > { %vm481_vm7 = vcmask (!%p218_p9), 1043456   ;;  %s1205_s29 = smov (!%p218_p9), [#allocation4]  }
  0x18   : > { %s247_s10 = scalar_select %p246_p10, %s1265_s5, 1 }
  0x1a   : > { %s1064_s11 = smul.u32 12, %s247_s10 }
  0x1c   : > { %s250_s14 = scalar_lea.vmem %s1666_s0, %s1064_s11 }
  0x1d   : > { %v1297_v1 = vld.sshfl [vmem:[%s250_s14 + $0x4] sm:$0x33 pattern:$0x76325410] }
  0x1e   : > { %v323_v2 = vrot.slane %v1297_v1, 5  ;;  %v1300_v3 = vld.sshfl [vmem:[%s250_s14 + $0x8] sm:$0x33 pattern:$0x76325410]  ;;  %v1303_v4 = vshrl.u32 %v1297_v1, 16  ;;  %v1340_v22 = vcombine.high %v1297_v1, %v1297_v1 }
  0x1f   : > { %v1305_v5 = vld.sshfl [vmem:[%s250_s14] sm:$0x33 pattern:$0x76325410]  ;;  %v1308_v6 = vshll.u32 %v1297_v1, 16  ;;  %v1311_v7 = vshrl.u32 %v1300_v3, 16 }
  0x20   : > { %328 = vrot.lane.b32.xlu0 %v323_v2, %s1196_s15  ;;  %v1318_v8 = vcombine.high %v1305_v5, %v1305_v5  ;;  %v305_v9 = vrot.slane %v1303_v4, 6  ;;  %v1322_v10 = vshll.u32 %v1300_v3, 16  ;;  %v1325_v11 = vshrl.u32 %v1305_v5, 16 }
  0x21   : > { %v308_v12 = vrot.slane %v1308_v6, 7  ;;  %v670_v13 = vrot.slane %v1311_v7, 6  ;;  %v1330_v14 = vshll.u32 %v1305_v5, 16  ;;  %v1350_v25 = vshrl.u32 %v1340_v22, 16 }
  0x22   : > { %v322_v15 = vrot.slane %v1318_v8, 5  ;;  %v673_v16 = vrot.slane %v1322_v10, 7  ;;  %v289_v17 = vrot.slane %v1325_v11, 6  ;;  %v1343_v23 = vshrl.u32 %v1318_v8, 16 }
  0x23   : > { %v309_v18 = vor.u32 %v308_v12, %v305_v9  ;;  %v292_v19 = vrot.slane %v1330_v14, 7  ;;  %v1346_v24 = vshll.u32 %v1318_v8, 16  ;;  %v1353_v26 = vshll.u32 %v1340_v22, 16 }
  0x24   : > { %326 = vrot.lane.b32.xlu1 %v322_v15, %s1196_s15  ;;  %v674_v20 = vor.u32 %v673_v16, %v670_v13  ;;  %v686_v27 = vrot.slane %v1340_v22, 5  ;;  %v297_v28 = vrot.slane %v1343_v23, 6  ;;  %v687_v30 = vrot.slane %v1300_v3, 5 }
  0x25   : > { %314 = vrot.lane.b32.xlu0 %v309_v18, %s1197_s16  ;;  %v293_v21 = vor.u32 %v292_v19, %v289_v17  ;;  %v300_v29 = vrot.slane %v1346_v24, 7  ;;  %v662_v31 = vrot.slane %v1350_v25, 6  ;;  %v665_v32 = vrot.slane %v1353_v26, 7 }
  0x26   : > { %v321_v34 = vrot.slane %v1305_v5, 5  ;;  %v336_v35 = vrot.slane %v1343_v23, 3  ;;  %v337_v36 = vrot.slane %v1346_v24, 4  ;;  %v339_v38 = vrot.slane %v1303_v4, 3 }
  0x27   : > { %v301_v33 = vor.u32 %v300_v29, %v297_v28  ;;  %v666_v37 = vor.u32 %v665_v32, %v662_v31  ;;  %v340_v39 = vrot.slane %v1308_v6, 4  ;;  %v408_v40 = vrot.slane %v1303_v4, 5 }
  0x28   : > { %679 = vrot.lane.b32.xlu1 %v674_v20, %s1197_s16  ;;  %v409_v41 = vrot.slane %v1308_v6, 6  ;;  %v764_v42 = vrot.slane %v1350_v25, 5  ;;  %v765_v43 = vrot.slane %v1353_v26, 6  ;;  %v767_v44 = vrot.slane %v1311_v7, 5 }
  0x29   : > { %310 = vrot.lane.b32.xlu0 %v293_v21, %s1197_s16  ;;  %v768_v45 = vrot.slane %v1322_v10, 6  ;;  %v402_v46 = vrot.slane %v1325_v11, 5  ;;  %v403_v47 = vrot.slane %v1330_v14, 6  ;;  %v338_v50 = vor.u32 %v337_v36, %v336_v35  ;;  %v261_v35 = vld [vmem:[%s1668_s2 + $0x8] sm:$0xff]  ;;  %v263_v36 = vld [vmem:[%s1668_s2 + $0x18] sm:$0xff] }
  0x2a   : > { %v1379_v48 = vor.u32 %v409_v41, %v408_v40  ;;  %v1381_v49 = vor.u32 %v765_v43, %v764_v42  ;;  %v341_v53 = vor.u32 %v340_v39, %v339_v38  ;;  %v699_v54 = vrot.slane %v1350_v25, 3 }
  0x2b   : > { %v1384_v51 = vor.u32 %v768_v45, %v767_v44  ;;  %v1386_v52 = vor.u32 %v403_v47, %v402_v46  ;;  %v700_v55 = vrot.slane %v1353_v26, 4  ;;  %v702_v56 = vrot.slane %v1311_v7, 3 }
  0x2c   : > { %675 = vrot.lane.b32.xlu1 %v309_v18, %s1197_s16  ;;  %v703_v57 = vrot.slane %v1322_v10, 4  ;;  %v333_v59 = vrot.slane %v1325_v11, 3  ;;  %v334_v60 = vrot.slane %v1330_v14, 4  ;;  %v354_v63 = vrot.slane %v1318_v8, 2 }
  0x2d   : > { %690 = vrot.lane.b32.xlu0 %v686_v27, %s1196_s15  ;;  %v701_v58 = vor.u32 %v700_v55, %v699_v54  ;;  %v355_v0 = vrot.slane %v1297_v1, 2  ;;  %v716_v9 = vrot.slane %v1340_v22, 2  ;;  %v717_v12 = vrot.slane %v1300_v3, 2 }
  0x2e   : > { %v704_v61 = vor.u32 %v703_v57, %v702_v56  ;;  %v335_v62 = vor.u32 %v334_v60, %v333_v59  ;;  %v366_v13 = vrot.slane %v1346_v24, 1  ;;  %v353_v15 = vrot.slane %v1305_v5, 2 }
  0x2f   : > { %v727_v17 = vrot.slane %v1353_v26, 1  ;;  %v728_v18 = vrot.slane %v1322_v10, 1  ;;  %v365_v19 = vrot.slane %v1330_v14, 1  ;;  %v391_v10 = vrot.slane %v1318_v8, 7 }
  0x30   : > { %692 = vrot.lane.b32.xlu1 %v687_v30, %s1196_s15  ;;  %v392_v14 = vrot.slane %v1297_v1, 7  ;;  %v751_v29 = vrot.slane %v1340_v22, 7  ;;  %v405_v31 = vrot.slane %v1343_v23, 5  ;;  %v406_v32 = vrot.slane %v1346_v24, 6 }
  0x31   : > { %312 = vrot.lane.b32.xlu0 %v301_v33, %s1197_s16  ;;  %v1118_v20 = vpack.i.bf16 %v728_v18, %v727_v17  ;;  %v730_v26 = vor.u32 %v727_v17, %v1350_v25  ;;  %v731_v28 = vor.u32 %v728_v18, %v1311_v7  ;;  %v368_v30 = vor.u32 %v365_v19, %v1325_v11 }
  0x32   : > { %v390_v25 = vrot.slane %v1305_v5, 7  ;;  %v407_v7 = vor.u32 %v406_v32, %v405_v31  ;;  %v424_v11 = vrot.slane %v1297_v1, 4  ;;  %v782_v24 = vrot.slane %v1300_v3, 4 }
  0x33   : > { %v422_v33 = vrot.slane %v1305_v5, 4 }
  0x34   : > { %677 = vrot.lane.b32.xlu1 %v666_v37, %s1197_s16 }
  0x35   : > { %324 = vrot.lane.b32.xlu0 %v321_v34, %s1196_s15  ;;  %v260_v34 = vld [vmem:[%s1668_s2] sm:$0xff] }
  0x38   : > { %344 = vrot.lane.b32.xlu1 %v338_v50, %s1198_s17 }
  0x39   : > { %346 = vrot.lane.b32.xlu0 %v341_v53, %s1198_s17 }
  0x3c   : > { %688 = vrot.lane.b32.xlu1 %v323_v2, %s1196_s15  ;;  %v367_v2 = vrot.slane %v1308_v6, 1  ;;  %v369_v6 = vor.u32 %v366_v13, %v1343_v23  ;;  %v1204_v23 = vmov 0   ;;  %s244_s15 = sand.u32 1, %s1186_s24  }
  0x3d   : > { %707 = vrot.lane.b32.xlu0 %v701_v58, %s1198_s17  ;;  %564 = vmatprep.mubr.bf16.mxu0 %v1204_v23  ;;  %s245_s16 = scalar_lea.vmem [#allocation4], %s244_s15 }
  0x3e   : > { %v1113_v16 = vpack.i.bf16 %v367_v2, %v366_v13  ;;  %v1123_v21 = vpack.i.bf16 %v367_v2, %v365_v19  ;;  %v370_v27 = vor.u32 %v367_v2, %v1303_v4  ;;  %v752_v4 = vrot.slane %v1300_v3, 7  ;;  %865 = vmatprep.mubr.bf16.mxu1 %v1204_v23  ;;  %1129 = vset.pattern.permute.xlu0 %v1204_v23  ;;  %v262_v3 = vld [vmem:[%s1668_s2 + $0x10] sm:$0xff] }
  0x3f   : > { %1128 = vset.pattern.permute.xlu1 %v1204_v23 }
  0x40   : > { %709 = vrot.lane.b32.xlu1 %v704_v61, %s1198_s17 }
  0x41   : > { %342 = vrot.lane.b32.xlu0 %v335_v62, %s1198_s17 }
  0x44   : > { %358 = vrot.lane.b32.xlu1 %v354_v63, %s1199_s18 }
  0x45   : > { %360 = vrot.lane.b32.xlu0 %v355_v0, %s1199_s18 }
  0x48   : > { %705 = vrot.lane.b32.xlu1 %v341_v53, %s1198_s17  ;;  %s987_s17 = sshll.u32 %s245_s16, 4  ;;  %s1621_s17 = int_to_ptr.vmem [resolvable:$true] %s987_s17 }
  0x49   : > { %720 = vrot.lane.b32.xlu0 %v716_v9, %s1199_s18  ;;  %s1132_s27 = scalar_lea.vmem %s1621_s17, 16 }
  0x4a   : > { %p1133_p11 = scmp.ne.s32.totalorder %s1621_s17, %s1132_s27 }
  0x4c   : > { %722 = vrot.lane.b32.xlu1 %v717_v12, %s1199_s18  ;;  %p1134_p12 = pnand %p1133_p11, %p1282_p5 }
  0x4d   : > { %356 = vrot.lane.b32.xlu0 %v353_v15, %s1199_s18 }
  0x4e   : > { %p1135_p13 = pneg %p1134_p12 }
  0x50   : > { %1114 = vrot.lane.b32.xlu1 %v1113_v16, %s1200_s19 }
  0x51   : > { %718 = vrot.lane.b32.xlu0 %v355_v0, %s1199_s18  ;;  %s1061_s18 = sshll.u32 %s1265_s5, 4  ;;  %s1136_s5 = sshll.u32 %s1205_s29, 4  ;;  %s1137_s5 = int_to_ptr.vmem [resolvable:$false] %s1136_s5 }
  0x52   : > { %s1138_s30 = scalar_lea.vmem %s1137_s5, 32  ;;  %p1139_p0 = scmp.lt.s32.totalorder %s1621_s17, %s1137_s5 }
  0x53   : > { %p1140_p1 = scmp.lt.s32.totalorder %s1138_s30, %s1132_s27 }
  0x54   : > { %1119 = vrot.lane.b32.xlu1 %v1118_v20, %s1200_s19 }
  0x55   : > { %1124 = vrot.lane.b32.xlu0 %v1123_v21, %s1200_s19  ;;  %p1141_p2 = por %p1140_p1, %p1139_p0 }
  0x57   : > { %p1142_p3 = pnand %p1141_p2, %p1135_p13 }
  0x58   : > { %379 = vrot.lane.b32.xlu1 %v369_v6, %s1200_s19 }
  0x59   : > { %381 = vrot.lane.b32.xlu0 %v370_v27, %s1200_s19 }
  0x5c   : > { %395 = vrot.lane.b32.xlu1 %v391_v10, %s1201_s20 }
  0x5d   : > { %397 = vrot.lane.b32.xlu0 %v392_v14, %s1201_s20 }
  0x60   : > { %740 = vrot.lane.b32.xlu1 %v730_v26, %s1200_s19 }
  0x61   : > { %742 = vrot.lane.b32.xlu0 %v731_v28, %s1200_s19 }
  0x64   : > { %755 = vrot.lane.b32.xlu1 %v751_v29, %s1201_s20 }
  0x65   : > { %757 = vrot.lane.b32.xlu0 %v752_v4, %s1201_s20 }
  0x68   : > { %377 = vrot.lane.b32.xlu1 %v368_v30, %s1200_s19 }
  0x69   : > { %393 = vrot.lane.b32.xlu0 %v390_v25, %s1201_s20 }
  0x6c   : > { %413 = vrot.lane.b32.xlu1 %v407_v7, %s1202_s21 }
  0x6d   : > { %415 = vrot.lane.b32.xlu0 %v1379_v48, %s1202_s21 }
  0x70   : > { %738 = vrot.lane.b32.xlu1 %v370_v27, %s1200_s19 }
  0x71   : > { %753 = vrot.lane.b32.xlu0 %v392_v14, %s1201_s20 }
  0x74   : > { %772 = vrot.lane.b32.xlu1 %v1381_v49, %s1202_s21 }
  0x75   : > { %774 = vrot.lane.b32.xlu0 %v1384_v51, %s1202_s21 }
  0x78   : > { %411 = vrot.lane.b32.xlu1 %v1386_v52, %s1202_s21 }
  0x79   : > { %427 = vrot.lane.b32.xlu0 %v1318_v8, %s1203_s22 }
  0x7c   : > { %429 = vrot.lane.b32.xlu1 %v424_v11, %s1203_s22 }
  0x7d   : > { %770 = vrot.lane.b32.xlu0 %v1379_v48, %s1202_s21  ;;  %s1626_s21 = scalar_lea.hbm %s1672_s6, %s1061_s18 }
  0x80   : > { %785 = vrot.lane.b32.xlu1 %v1340_v22, %s1203_s22 }
  0x81   : > { %787 = vrot.lane.b32.xlu0 %v782_v24, %s1203_s22 }
  0x84   : > { %425 = vrot.lane.b32.xlu1 %v422_v33, %s1203_s22 }
  0x85   : > { %783 = vrot.lane.b32.xlu0 %v424_v11, %s1203_s22  ;;  %s975_s22 = scalar_lea.sflag [#allocation5], %s244_s15 }
  0x88   : > { %497 = vperm.xlu1 %1128, %v260_v34  }
  0x89   : > { %502 = vperm.xlu0 %1129, %v261_v35  }
  0x8c   : > { %507 = vperm.xlu1 %1128, %v262_v3  }
  0x90   : > { %512 = vperm.xlu1 %1128, %v263_v36  }
  0x92   : > { %v329_v37 = vpop.permute.xlu0 %328 }
  0x96   : > { %v327_v38 = vpop.permute.xlu1 %326 }
  0x97   : > { %v315_v39 = vpop.permute.xlu0 %314  ;;  %v332_v16 = vsel %vm330_vm3, %v327_v38, %v329_v37 }
  0x9a   : > { %v680_v40 = vpop.permute.xlu1 %679 }
  0x9b   : > { %v311_v41 = vpop.permute.xlu0 %310 }
  0x9e   : > { %v676_v42 = vpop.permute.xlu1 %675 }
  0x9f   : > { %v691_v43 = vpop.permute.xlu0 %690 }
  0xa2   : > { %v693_v44 = vpop.permute.xlu1 %692 }
  0xa3   : > { %v313_v45 = vpop.permute.xlu0 %312 }
  0xa4   : > { %v318_v59 = vsel %vm316_vm0, %v313_v45, %v315_v39  ;;  %v317_v62 = vsel %vm316_vm0, %v311_v41, %v313_v45 }
  0xa5   : > { %v438_v0 = vsel %vm1455_vm4, %v1318_v8, %v318_v59  ;;  %v695_v8 = vsel %vm330_vm3, %v691_v43, %v693_v44  ;;  %v437_v17 = vsel %vm1455_vm4, %v1305_v5, %v317_v62 }
  0xa6   : > { %v678_v46 = vpop.permute.xlu1 %677  ;;  %v446_v20 = vsel %vm439_vm8, %v438_v0, %v332_v16 }
  0xa7   : > { %v325_v47 = vpop.permute.xlu0 %324  ;;  %v682_v60 = vsel %vm316_vm0, %v678_v46, %v680_v40  ;;  %v681_v9 = vsel %vm316_vm0, %v676_v42, %v678_v46  ;;  %vm399_vm0 = vcmask 752640  }
  0xa8   : > { %v792_v12 = vsel %vm1455_vm4, %v1340_v22, %v682_v60  ;;  %v331_v13 = vsel %vm330_vm3, %v325_v47, %v327_v38  ;;  %v791_v19 = vsel %vm1455_vm4, %v1297_v1, %v681_v9  ;;  %vm491_vm4 = vsmask.f32 5376 }
  0xa9   : > { %v442_v5 = vsel %vm439_vm8, %v437_v17, %v331_v13  ;;  %v799_v1 = vsel %vm439_vm8, %v792_v12, %v695_v8 }
  0xaa   : > { %v345_v48 = vpop.permute.xlu1 %344 }
  0xab   : > { %v347_v49 = vpop.permute.xlu0 %346 }
  0xac   : > { %v350_v15 = vsel %vm348_vm5, %v345_v48, %v347_v49 }
  0xad   : > { %v452_v14 = vsel %vm1470_vm13, %v446_v20, %v350_v15 }
  0xae   : > { %v689_v50 = vpop.permute.xlu1 %688 }
  0xaf   : > { %v708_v51 = vpop.permute.xlu0 %707  ;;  %v694_v26 = vsel %vm330_vm3, %v689_v50, %v691_v43  ;;  %vm467_vm3 = vcmask 1040384  }
  0xb0   : > { %v795_v24 = vsel %vm439_vm8, %v791_v19, %v694_v26 }
  0xb2   : > { %v710_v52 = vpop.permute.xlu1 %709 }
  0xb3   : > { %v343_v53 = vpop.permute.xlu0 %342  ;;  %v712_v28 = vsel %vm348_vm5, %v708_v51, %v710_v52 }
  0xb4   : > { %v349_v29 = vsel %vm348_vm5, %v343_v53, %v345_v48  ;;  %v802_v36 = vsel %vm1470_vm13, %v799_v1, %v712_v28 }
  0xb5   : > { %v451_v37 = vsel %vm1470_vm13, %v442_v5, %v349_v29 }
  0xb6   : > { %v359_v54 = vpop.permute.xlu1 %358 }
  0xb7   : > { %v361_v55 = vpop.permute.xlu0 %360 }
  0xb8   : > { %v364_v18 = vsel %vm362_vm9, %v359_v54, %v361_v55 }
  0xb9   : > { %v460_v30 = vsel %vm453_vm10, %v452_v14, %v364_v18 }
  0xba   : > { %v706_v56 = vpop.permute.xlu1 %705 }
  0xbb   : > { %v721_v57 = vpop.permute.xlu0 %720  ;;  %v711_v31 = vsel %vm348_vm5, %v706_v56, %v708_v51  ;;  %vm1527_vm5 = vmand %vm439_vm8, %vm477_vm2  ;;  %vm525_vm8 = vcmask 261120  }
  0xbc   : > { %v801_v40 = vsel %vm1470_vm13, %v795_v24, %v711_v31 }
  0xbe   : > { %v723_v61 = vpop.permute.xlu1 %722 }
  0xbf   : > { %v357_v63 = vpop.permute.xlu0 %356  ;;  %v725_v32 = vsel %vm362_vm9, %v721_v57, %v723_v61 }
  0xc0   : > { %v363_v25 = vsel %vm362_vm9, %v357_v63, %v359_v54  ;;  %v809_v42 = vsel %vm453_vm10, %v802_v36, %v725_v32 }
  0xc1   : > { %v456_v43 = vsel %vm453_vm10, %v451_v37, %v363_v25 }
  0xc2   : > { %v1115_v22 = vpop.permute.xlu1 %1114 }
  0xc3   : > { %v1117_v21 = vunpack.i.h.bf16 %v1115_v22  ;;  %v1116_v6 = vunpack.i.l.bf16 %v1115_v22  ;;  %v719_v27 = vpop.permute.xlu0 %718 }
  0xc4   : > { %v724_v33 = vsel %vm362_vm9, %v719_v27, %v721_v57  ;;  %vm1535_vm9 = vmand %vm453_vm10, %vm491_vm4 }
  0xc5   : > { %v385_v4 = vsel %vm383_vm14, %v1116_v6, %v1117_v21  ;;  %v805_v48 = vsel %vm453_vm10, %v801_v40, %v724_v33  ;;  %vm951_vm10 = vcmask 7168  }
  0xc6   : > { %v1120_v7 = vpop.permute.xlu1 %1119  ;;  %v466_v11 = vsel %vm1487_vm15, %v460_v30, %v385_v4 }
  0xc7   : > { %v1122_v34 = vunpack.i.h.bf16 %v1120_v7  ;;  %v1121_v35 = vunpack.i.l.bf16 %v1120_v7  ;;  %532 = vmatprep.subr.bf16.mxu0 %v466_v11  ;;  %v1125_v3 = vpop.permute.xlu0 %1124 }
  0xc8   : > { %v1127_v38 = vunpack.i.h.bf16 %v1125_v3  ;;  %v1126_v39 = vunpack.i.l.bf16 %v1125_v3 }
  0xc9   : > { %v745_v41 = vsel %vm383_vm14, %v1121_v35, %v1122_v34 }
  0xca   : > { %v380_v44 = vpop.permute.xlu1 %379  ;;  %v812_v45 = vsel %vm1487_vm15, %v809_v42, %v745_v41  ;;  %v384_v46 = vsel %vm383_vm14, %v1126_v39, %v1116_v6  ;;  %v744_v47 = vsel %vm383_vm14, %v1127_v38, %v1121_v35 }
  0xcb   : > { %833 = vmatprep.subr.bf16.mxu1 %v812_v45  ;;  %v382_v49 = vpop.permute.xlu0 %381  ;;  %v465_v50 = vsel %vm1487_vm15, %v456_v43, %v384_v46  ;;  %v811_v51 = vsel %vm1487_vm15, %v805_v48, %v744_v47  ;;  %v1131_v46 = vld [vmem:[%s1667_s1 + $0x8] sm:$0xff]   ;;  %v595_v47 = vlaneseq }
  0xcc   : > { %533 = vmatpush1.bf16.msra.mxu0 %v465_v50  ;;  %834 = vmatpush1.bf16.msra.mxu1 %v811_v51  ;;  %v387_v8 = vsel %vm383_vm14, %v380_v44, %v382_v49  ;;  %v593_v51 = vld [vmem:[%s1669_s3] ss:$2 sm:$0x3] }
  0xcd   : > { %v596_v48 = vshrl.u32 %v595_v47, 7 }
  0xce   : > { %v396_v52 = vpop.permute.xlu1 %395 }
  0xcf   : > { %v398_v53 = vpop.permute.xlu0 %397  ;;  %v597_v50 = vsub.s32 0, %v596_v48 }
  0xd0   : > { %v401_v13 = vsel %vm399_vm0, %v396_v52, %v398_v53 }
  0xd1   : > { %v474_v17 = vsel %vm467_vm3, %v387_v8, %v401_v13 }
  0xd2   : > { %v741_v54 = vpop.permute.xlu1 %740 }
  0xd3   : > { %v743_v55 = vpop.permute.xlu0 %742 }
  0xd4   : > { %v747_v14 = vsel %vm383_vm14, %v741_v54, %v743_v55 }
  0xd6   : > { %v756_v56 = vpop.permute.xlu1 %755 }
  0xd7   : > { %v758_v57 = vpop.permute.xlu0 %757 }
  0xd8   : > { %v760_v6 = vsel %vm399_vm0, %v756_v56, %v758_v57  ;;  %v1589_v57 = vrot.slane %v593_v51, %v597_v50 }
  0xd9   : > { %v819_v1 = vsel %vm467_vm3, %v747_v14, %v760_v6 }
  0xda   : > { %v378_v58 = vpop.permute.xlu1 %377 }
  0xdb   : > { %v394_v59 = vpop.permute.xlu0 %393  ;;  %v386_v25 = vsel %vm383_vm14, %v378_v58, %v380_v44  ;;  %v1130_v44 = vld [vmem:[%s1667_s1] sm:$0xff]  }
  0xdc   : > { %v400_v28 = vsel %vm399_vm0, %v394_v59, %v396_v52  ;;  %v601_v52 = vsub.s32 1, %v596_v48 }
  0xdd   : > { %v470_v24 = vsel %vm467_vm3, %v386_v25, %v400_v28 }
  0xde   : > { %v414_v60 = vpop.permute.xlu1 %413 }
  0xdf   : > { %v416_v61 = vpop.permute.xlu0 %415 }
  0xe0   : > { %v419_v16 = vsel %vm417_vm1, %v414_v60, %v416_v61  ;;  %v1591_v61 = vrot.slane %v593_v51, %v601_v52 }
  0xe1   : > { %v480_v19 = vsel %vm1527_vm5, %v474_v17, %v419_v16 }
  0xe2   : > { %v739_v62 = vpop.permute.xlu1 %738 }
  0xe3   : > { %v754_v63 = vpop.permute.xlu0 %753  ;;  %v746_v33 = vsel %vm383_vm14, %v739_v62, %v741_v54 }
  0xe4   : > { %v759_v4 = vsel %vm399_vm0, %v754_v63, %v756_v56 }
  0xe5   : > { %v815_v3 = vsel %vm467_vm3, %v746_v33, %v759_v4 }
  0xe6   : > { %v773_v0 = vpop.permute.xlu1 %772 }
  0xe7   : > { %v775_v9 = vpop.permute.xlu0 %774 }
  0xe8   : > { %v777_v10 = vsel %vm417_vm1, %v773_v0, %v775_v9 }
  0xe9   : > { %v822_v30 = vsel %vm1527_vm5, %v819_v1, %v777_v10 }
  0xea   : > { %v412_v12 = vpop.permute.xlu1 %411 }
  0xeb   : > { %v428_v2 = vpop.permute.xlu0 %427  ;;  %v418_v31 = vsel %vm417_vm1, %v412_v12, %v414_v60 }
  0xec   : > { %v479_v36 = vsel %vm1527_vm5, %v470_v24, %v418_v31 }
  0xee   : > { %v430_v18 = vpop.permute.xlu1 %429 }
  0xef   : > { %v433_v20 = vsel %vm431_vm6, %v428_v2, %v430_v18  ;;  %v771_v21 = vpop.permute.xlu0 %770 }
  0xf0   : > { %v488_v27 = vsel %vm481_vm7, %v480_v19, %v433_v20  ;;  %v776_v7 = vsel %vm417_vm1, %v771_v21, %v773_v0 }
  0xf1   : > { %v494_v5 = vsel %vm1535_vm9, %v488_v27, 0  ;;  %v821_v39 = vsel %vm1527_vm5, %v815_v3, %v776_v7 }
  0xf2   : > { %v786_v26 = vpop.permute.xlu1 %785  ;;  %534 = vmatprep.subr.bf16.mxu0 %v494_v5 }
  0xf3   : > { %v788_v29 = vpop.permute.xlu0 %787 }
  0xf4   : > { %v790_v32 = vsel %vm431_vm6, %v786_v26, %v788_v29 }
  0xf5   : > { %v829_v11 = vsel %vm481_vm7, %v822_v30, %v790_v32 }
  0xf6   : > { %v426_v34 = vpop.permute.xlu1 %425  ;;  %v832_v35 = vsel %vm1535_vm9, %v829_v11, 0 }
  0xf7   : > { %v432_v37 = vsel %vm431_vm6, %v426_v34, %v428_v2  ;;  %v784_v38 = vpop.permute.xlu0 %783  ;;  %835 = vmatprep.subr.bf16.mxu1 %v832_v35 }
  0xf8   : > { %v789_v40 = vsel %vm431_vm6, %v784_v38, %v786_v26  ;;  %v484_v41 = vsel %vm481_vm7, %v479_v36, %v432_v37 }
  0xf9   : > { %v493_v42 = vsel %vm1535_vm9, %v484_v41, 0  ;;  %v825_v43 = vsel %vm481_vm7, %v821_v39, %v789_v40 }
  0xfa   : > { %535 = vmatpush1.bf16.msra.mxu0 %v493_v42  ;;  %v831_v45 = vsel %vm1535_vm9, %v825_v43, 0 }
  0xfb   : > { %836 = vmatpush1.bf16.msra.mxu1 %v831_v45 }
  0xfd   : > { %1052 = vmatmul.mubr.msk.bf16.vlgmr.msra.gmra.mrb[0].mxu0 %vm525_vm8, %v1130_v44 }
  0xfe   : > { %1058 = vmatmul.mubr.msk.bf16.vlgmr.msra.gmra.mrb[0].mxu1 %vm525_vm8, %v1130_v44  ;;  %574 = vmatprep.mubr.bf16.mxu0 %v1204_v23 }
  0xff   : > { %875 = vmatprep.mubr.bf16.mxu1 %v1204_v23  ;;  %v1060_v23 = vld [vmem:[%s1669_s3 + $0x1] ss:$2 sm:$0x3] }
 0x100   : > { %v1593_v0 = vrot.slane %v1060_v23, %v597_v50  ;;  %v904_v16 = vrot.slane %v1060_v23, %v601_v52 }
 0x105   : > { %1053 = vmatmul.mubr.msk.bf16.gmra.mrb[4].mxu0 %vm525_vm8, %v1131_v46 }
 0x106   : > { %1059 = vmatmul.mubr.msk.bf16.gmra.mrb[4].mxu1 %vm525_vm8, %v1131_v46 }
 0x107   : > { %v498_v49 = vpop.permute.xlu1 %497 }
 0x108   : > { %v503_v53 = vpop.permute.xlu0 %502 }
 0x10b   : > { %v508_v55 = vpop.permute.xlu1 %507 }
 0x10f   : > { %v513_v31 = vpop.permute.xlu1 %512 }
 0x1d0   : > { %v566_v54 = vpop.f32.mrb[0].mxu0 }
 0x1d1   : > { %v567_v56 = vadd.f32 %v566_v54, %v498_v49  ;;  %v568_v58 = vpop.f32.mrb[1].mxu0  ;;  %v867_v59 = vpop.f32.mrb[0].mxu1 }
 0x1d2   : > { %v569_v60 = vadd.f32 %v568_v58, %v498_v49  ;;  %v570_v62 = vpop.f32.mrb[2].mxu0  ;;  %v868_v63 = vadd.f32 %v867_v59, %v498_v49  ;;  %v869_v9 = vpop.f32.mrb[1].mxu1 }
 0x1d3   : > { %v585_v12 = vmax.f32 %v567_v56, 0.0  ;;  %v571_v13 = vadd.f32 %v570_v62, %v503_v53  ;;  %v572_v2 = vpop.f32.mrb[3].mxu0  ;;  %v870_v15 = vadd.f32 %v869_v9, %v498_v49  ;;  %v871_v8 = vpop.f32.mrb[2].mxu1 }
 0x1d4   : > { %v586_v17 = vmax.f32 %v569_v60, 0.0  ;;  %v886_v18 = vmax.f32 %v868_v63, 0.0  ;;  %v573_v22 = vadd.f32 %v572_v2, %v503_v53  ;;  %v872_v19 = vadd.f32 %v871_v8, %v503_v53  ;;  %v873_v20 = vpop.f32.mrb[3].mxu1 }
 0x1d5   : > { %v605_v21 = vmul.f32 %v1589_v57, %v585_v12  ;;  %v587_v6 = vmax.f32 %v571_v13, 0.0  ;;  %v887_v27 = vmax.f32 %v870_v15, 0.0  ;;  %v874_v10 = vadd.f32 %v873_v20, %v503_v53 }
 0x1d6   : > { %v606_v5 = vmul.f32 %v1591_v61, %v586_v17  ;;  %v907_v14 = vmul.f32 %v1593_v0, %v886_v18  ;;  %v588_v26 = vmax.f32 %v573_v22, 0.0  ;;  %v888_v1 = vmax.f32 %v872_v19, 0.0 }
 0x1d7   : > { %v607_v28 = vmul.f32 %v1589_v57, %v587_v6  ;;  %v908_v29 = vmul.f32 %v904_v16, %v887_v27  ;;  %v889_v4 = vmax.f32 %v874_v10, 0.0 }
 0x1d8   : > { %v608_v30 = vmul.f32 %v1591_v61, %v588_v26  ;;  %v576_v32 = vpop.f32.mrb[4].mxu0  ;;  %v613_v25 = vadd.f32 %v606_v5, %v605_v21  ;;  %v909_v7 = vmul.f32 %v1593_v0, %v888_v1 }
 0x1d9   : > { %v577_v11 = vadd.f32 %v576_v32, %v508_v55  ;;  %v578_v24 = vpop.f32.mrb[5].mxu0  ;;  %v877_v33 = vpop.f32.mrb[4].mxu1  ;;  %v915_v34 = vadd.f32 %v908_v29, %v907_v14  ;;  %v910_v35 = vmul.f32 %v904_v16, %v889_v4  ;;  %v946_v14 = vld [vmem:[%s1670_s4 + $0x18] sm:$0xff] }
 0x1da   : > { %v579_v3 = vadd.f32 %v578_v24, %v508_v55  ;;  %v580_v36 = vpop.f32.mrb[6].mxu0  ;;  %v878_v37 = vadd.f32 %v877_v33, %v508_v55  ;;  %v879_v38 = vpop.f32.mrb[5].mxu1  ;;  %v614_v39 = vadd.f32 %v608_v30, %v607_v28 }
 0x1db   : > { %v589_v40 = vmax.f32 %v577_v11, 0.0  ;;  %v581_v41 = vadd.f32 %v580_v36, %v513_v31  ;;  %v582_v42 = vpop.f32.mrb[7].mxu0  ;;  %v880_v43 = vadd.f32 %v879_v38, %v508_v55  ;;  %v881_v44 = vpop.f32.mrb[6].mxu1  ;;  %v923_v45 = vadd.f32 %v915_v34, %v613_v25 }
 0x1dc   : > { %v590_v46 = vmax.f32 %v579_v3, 0.0  ;;  %v890_v47 = vmax.f32 %v878_v37, 0.0  ;;  %v583_v48 = vadd.f32 %v582_v42, %v513_v31  ;;  %v882_v49 = vadd.f32 %v881_v44, %v513_v31  ;;  %v883_v50 = vpop.f32.mrb[7].mxu1 }
 0x1dd   : > { %v609_v51 = vmul.f32 %v1589_v57, %v589_v40  ;;  %v591_v52 = vmax.f32 %v581_v41, 0.0  ;;  %v891_v53 = vmax.f32 %v880_v43, 0.0  ;;  %v884_v23 = vadd.f32 %v883_v50, %v513_v31  ;;  %935 = vadd.xlane.f32.xlu0 %v923_v45 }
 0x1de   : > { %v610_v54 = vmul.f32 %v1591_v61, %v590_v46  ;;  %v911_v56 = vmul.f32 %v1593_v0, %v890_v47  ;;  %v592_v58 = vmax.f32 %v583_v48, 0.0  ;;  %v892_v59 = vmax.f32 %v882_v49, 0.0 }
 0x1df   : > { %v611_v55 = vmul.f32 %v1589_v57, %v591_v52  ;;  %v912_v60 = vmul.f32 %v904_v16, %v891_v53  ;;  %v893_v62 = vmax.f32 %v884_v23, 0.0  ;;  %v916_v63 = vadd.f32 %v910_v35, %v909_v7  ;;  %v943_v57 = vld [vmem:[%s1670_s4] sm:$0xff] }
 0x1e0   : > { %v612_v9 = vmul.f32 %v1591_v61, %v592_v58  ;;  %v913_v12 = vmul.f32 %v1593_v0, %v892_v59  ;;  %v615_v13 = vadd.f32 %v610_v54, %v609_v51  ;;  %v944_v61 = vld [vmem:[%s1670_s4 + $0x8] sm:$0xff]  ;;  %v966_v35 = vld [vmem:[#allocation3] sm:$0x1] }
 0x1e1   : > { %v914_v2 = vmul.f32 %v904_v16, %v893_v62  ;;  %v924_v15 = vadd.f32 %v916_v63, %v614_v39  ;;  %v917_v8 = vadd.f32 %v912_v60, %v911_v56  ;;  %v945_v16 = vld [vmem:[%s1670_s4 + $0x10] sm:$0xff] }
 0x1e2   : > { %v616_v17 = vadd.f32 %v612_v9, %v611_v55 }
 0x1e3   : > { %937 = vadd.xlane.f32.xlu1 %v924_v15  ;;  %v925_v18 = vadd.f32 %v917_v8, %v615_v13  ;;  %v918_v22 = vadd.f32 %v914_v2, %v913_v12 }
 0x1e5   : > { %939 = vadd.xlane.f32.xlu0 %v925_v18  ;;  %v926_v19 = vadd.f32 %v918_v22, %v616_v17 }
 0x1e9   : > { %941 = vadd.xlane.f32.xlu0 %v926_v19 }
 0x26a   : > { %v936_v20 = vpop.xlane.xlu0 %935 }
 0x26b   : > { %v947_v21 = vmul.f32 %v943_v57, %v936_v20 }
 0x26d   : > { %v952_v26 = vsel %vm951_vm10, %v947_v21, 0.0 }
 0x270   : > { %v938_v0 = vpop.xlane.xlu1 %937 }
 0x271   : > { %v948_v6 = vmul.f32 %v944_v61, %v938_v0 }
 0x272   : > { %v940_v27 = vpop.xlane.xlu0 %939 }
 0x273   : > { %v953_v10 = vsel %vm951_vm10, %v948_v6, 0.0  ;;  %v949_v5 = vmul.f32 %v945_v16, %v940_v27 }
 0x274   : > { %v954_v28 = vadd.f32 %v953_v10, %v952_v26 }
 0x275   : > { %v955_v1 = vsel %vm951_vm10, %v949_v5, 0.0 }
 0x276   : > { %v942_v29 = vpop.xlane.xlu0 %941  ;;  %v956_v30 = vadd.f32 %v955_v1, %v954_v28 }
 0x277   : > { %v950_v4 = vmul.f32 %v946_v14, %v942_v29 }
 0x279   : > { %v957_v31 = vsel %vm951_vm10, %v950_v4, 0.0 }
 0x27a   : > { %v958_v32 = vadd.f32 %v957_v31, %v956_v30 }
 0x27c   : > { %v959_v25 = vrot.slane %v958_v32, 4 }
 0x27e   : > { %v960_v7 = vadd.f32 %v959_v25, %v958_v32 }
 0x280   : > { %v961_v11 = vrot.slane %v960_v7, 2 }
 0x282   : > { %v962_v24 = vadd.f32 %v961_v11, %v960_v7 }
 0x284   : > { %v963_v33 = vrot.slane %v962_v24, 1 }
 0x286   : > { %v964_v34 = vadd.f32 %v963_v33, %v962_v24 }
 0x288   : > { %v965_v3 = vmul.f32 0.00390625, %v964_v34 }
 0x28a   : > { %v967_v36 = vadd.f32 %v966_v35, %v965_v3 }
 0x28c   : > { %970 = vperm.xlu1 %1128, %v967_v36  }
 0x30b   : > { %v971_v37 = vpop.permute.xlu1 %970 }
 0x30c   : > { %973 = vst [vmem:[%s245_s16] sm:$0x1] %v971_v37 }
 0x30d   : > { %1145 = shalt.err (!%p1142_p3)
}
 0x30e   : > { %s1146_s10 = scalar_lea.hbm %s1626_s21, 16  ;;  %s1150_s13 = scalar_lea.hbm %s1672_s6, 32 }
 0x30f   : > { %p1147_p4 = scmp.ne.s32.totalorder %s1626_s21, %s1146_s10  ;;  %p1151_p9 = scmp.lt.u32.totalorder %s1626_s21, %s1672_s6 }
 0x310   : > { %p1152_p10 = scmp.lt.u32.totalorder %s1150_s13, %s1146_s10  ;;  %p1154_p12 = scmp.lt.u32.totalorder %s1146_s10, %s1626_s21 }
 0x311   : > { %p1148_p7 = pnand %p1147_p4, %p1282_p5 }
 0x312   : > { %p1153_p11 = por %p1152_p10, %p1151_p9 }
 0x313   : > { %p1149_p8 = pneg %p1148_p7 }
 0x314   : > { %p1155_p13 = por %p1154_p12, %p1153_p11 }
 0x316   : > { %p1156_p0 = pnand %p1155_p13, %p1149_p8 }
 0x318   : > { %1159 = shalt.err (!%p1156_p0)
}
 0x319   : > { %1065 = dma.vmem_to_hbm [thread:$0]  (%p1282_p5), %s1621_s17, 16, %s1626_s21, %s975_s22  }
 0x31a PF: > { %p1071_p1 = scmp.ge.s32.totalorder %s1194_s26, 2  ;;  %s999_s16 = sand.u32 1, %s1182_s23  }
 0x31b   : > { %s1000_s18 = scalar_lea.sflag [#allocation5], %s999_s16 }
 0x31c   : > { %p1068_p2 = pnand %p1071_p1, %p1286_p6 }
 0x31e   : > { %1177 = dma.done.wait (!%p1068_p2), %s1000_s18, 16  }
 0x31f   : > { %1179 = vsyncadd (!%p1068_p2), %s1000_s18, 4294967280  ;;  %p18_p3 = scmp.ge.s32.totalorder %s1269_s28, 4   ;;  %s1685_s23 = smov %s1186_s24 }
 0x320   : > { %s1686_s24 = smov %s1190_s25  ;;  %s1687_s25 = smov %s1280_s7 }
 0x321   : > { %s1688_s26 = smov %s1269_s28  ;;  %20 = sbr.rel (!%p18_p3) target bundleno = 6 (0x6), region = 82 }
 0x328   :  { %1004 = vsyncpa [#allocation5], 1 }
 0x329   :  { %1006 = vsyncpa [#allocation5 + $0x1], 1 }

</bundles_post_ra>
